<compile_context>
chip_gen: v5e
topology: v5e:2x2
jax: 0.10.0
libtpu: 0.0.40
codegen_flags: <defaults>
</compile_context>

<pallas_src>
import jax
import jax.numpy as jnp
from jax.experimental import pallas as pl
from jax.experimental.pallas import tpu as pltpu

BN_EPS = 1e-5


def _pick_block(full, unit, cap):
    """Largest multiple of `unit` that divides `full` and is <= cap.

    Falls back to the full extent, which is always a legal TPU block size."""
    if full % unit != 0:
        return full
    for mult in range(min(cap, full) // unit, 0, -1):
        cand = mult * unit
        if full % cand == 0:
            return cand
    return full


def _stats_kernel(x_ref, sum_ref, sq_ref):
    # x_ref: (1, C_blk, T_blk); sum_ref / sq_ref: (C_blk, 1) accumulators that
    # stay VMEM-resident across the (batch, time) reduction axes.
    @pl.when((pl.program_id(1) == 0) & (pl.program_id(2) == 0))
    def _():
        sum_ref[...] = jnp.zeros_like(sum_ref)
        sq_ref[...] = jnp.zeros_like(sq_ref)

    xb = x_ref[0]  # (C_blk, T_blk)
    if xb.dtype != jnp.float32:
        xb = xb.astype(jnp.float32)
    # Single pass over x: sum and sum-of-squares (lane-axis reduce on the XLU).
    sum_ref[...] += jnp.sum(xb, axis=-1, keepdims=True)
    sq_ref[...] += jnp.sum(xb * xb, axis=-1, keepdims=True)


def _apply_kernel(x_ref, scale_ref, shift_ref, out_ref):
    # out = x * scale + shift; scale/shift are (1, C_blk, 1) and broadcast
    # along the lane (time) axis -> one fused multiply-add per element.
    out_ref[...] = (x_ref[...] * scale_ref[...] + shift_ref[...]).astype(out_ref.dtype)


def film_forward(x, cond, w_t, bias, *, c_block_cap=128, t_block_cap=1024):
    """x: (B, C, T), cond: (B, 1, D), w_t: (D, 2C) (= Linear.weight.T), bias: (2C,)."""
    B, C, T = x.shape
    cond2d = cond.reshape(B, -1).astype(jnp.float32)  # (B, D)

    C_blk = _pick_block(C, 8, c_block_cap)
    T_blk = _pick_block(T, 128, t_block_cap)
    nC, nT = C // C_blk, T // T_blk

    xbytes = x.size * x.dtype.itemsize

    # ---- pass 1: per-channel sum / sum-of-squares over (B, T) ----------------
    sums, sumsqs = pl.pallas_call(
        _stats_kernel,
        out_shape=(
            jax.ShapeDtypeStruct((C, 1), jnp.float32),
            jax.ShapeDtypeStruct((C, 1), jnp.float32),
        ),
        grid=(nC, B, nT),
        in_specs=[
            pl.BlockSpec((1, C_blk, T_blk), lambda c, b, t: (b, c, t)),
        ],
        out_specs=(
            pl.BlockSpec((C_blk, 1), lambda c, b, t: (c, 0)),
            pl.BlockSpec((C_blk, 1), lambda c, b, t: (c, 0)),
        ),
        compiler_params=pltpu.CompilerParams(
            dimension_semantics=("parallel", "arbitrary", "arbitrary")),
        cost_estimate=pl.CostEstimate(
            flops=3 * x.size, transcendentals=0,
            bytes_accessed=xbytes + 2 * C * 4),
    )(x)

    # ---- tiny per-(batch, channel) glue in plain JAX -------------------------
    n = float(B * T)
    mean = sums / n                                      # (C, 1)
    var = jnp.maximum(sumsqs / n - mean * mean, 0.0)     # biased variance
    inv_std = 1.0 / jnp.sqrt(var + BN_EPS)               # (C, 1)

    # adaptor: Linear(cond_dim, 2*num_features) -- tiny, so done in XLA.
    proj = cond2d @ w_t.astype(jnp.float32) + bias.astype(jnp.float32)  # (B, 2C)
    g = proj[:, :C]        # gamma, (B, C)
    b_mod = proj[:, C:]    # beta,  (B, C)

    # Fold BN + FiLM into a single per-(batch, channel) affine:
    #   y = ((x - mean) * inv_std) * g + b  ==  x * scale + shift
    scale = (g[:, :, None] * inv_std[None, :, :]).astype(jnp.float32)       # (B, C, 1)
    shift = (b_mod[:, :, None] - mean[None, :, :] * scale).astype(jnp.float32)

    # ---- pass 2: y = x * scale + shift ---------------------------------------
    out = pl.pallas_call(
        _apply_kernel,
        out_shape=jax.ShapeDtypeStruct((B, C, T), x.dtype),
        grid=(nC, B, nT),
        in_specs=[
            pl.BlockSpec((1, C_blk, T_blk), lambda c, b, t: (b, c, t)),
            pl.BlockSpec((1, C_blk, 1), lambda c, b, t: (b, c, 0)),
            pl.BlockSpec((1, C_blk, 1), lambda c, b, t: (b, c, 0)),
        ],
        out_specs=pl.BlockSpec((1, C_blk, T_blk), lambda c, b, t: (b, c, t)),
        compiler_params=pltpu.CompilerParams(
            dimension_semantics=("parallel", "parallel", "parallel")),
        cost_estimate=pl.CostEstimate(
            flops=2 * x.size, transcendentals=0,
            bytes_accessed=2 * xbytes + 2 * B * C * 4),
    )(x, scale, shift)
    return out


def film_reference(x, cond, w_t, bias):
    """Pure-JAX reference mirroring the PyTorch forward (training-mode BN)."""
    B, C, T = x.shape
    proj = cond.reshape(B, -1) @ w_t + bias          # (B, 2C)
    g = proj[:, :C][:, :, None]
    b = proj[:, C:][:, :, None]
    mean = jnp.mean(x, axis=(0, 2), keepdims=True)
    var = jnp.mean((x - mean) ** 2, axis=(0, 2), keepdims=True)
    xn = (x - mean) / jnp.sqrt(var + BN_EPS)
    return xn * g + b


def _run_case(B, C, T, D, seed):
    key = jax.random.PRNGKey(seed)
    kx, kc, kw, kb = jax.random.split(key, 4)

    x = jax.random.normal(kx, (B, C, T), dtype=jnp.float32)
    cond = jax.random.normal(kc, (B, 1, D), dtype=jnp.float32)

    # torch Linear default init: U(-1/sqrt(D), 1/sqrt(D)).
    bound = 1.0 / (D ** 0.5)
    w_t = jax.random.uniform(kw, (D, 2 * C), jnp.float32, -bound, bound)   # weight.T
    bias = jax.random.uniform(kb, (2 * C,), jnp.float32, -bound, bound)

    out = film_forward(x, cond, w_t, bias)
    out = jax.block_until_ready(out)

    ref = film_reference(x, cond, w_t, bias)
    assert out.shape == (B, C, T)
    assert jnp.allclose(out, ref, rtol=1e-4, atol=1e-4), (
        f"mismatch vs reference at shape {(B, C, T, D)}")


if __name__ == "__main__":
    # Small shape from the module spec (batch=2, num_features=4, time=16, cond_dim=8).
    _run_case(B=2, C=4, T=16, D=8, seed=0)
    # Slightly larger shape that exercises the tiled (multi-step) grid path.
    _run_case(B=2, C=16, T=2048, D=8, seed=0)

    print("KERNEL_OK")
</pallas_src>

<mosaic_0001>
module attributes {stable_mosaic.version = 11 : i64} {
  func.func @_stats_kernel(%arg0: i32, %arg1: i32, %arg2: i32, %arg3: memref<1x4x16xf32, #tpu.memory_space<vmem>>, %arg4: memref<4x1xf32, #tpu.memory_space<vmem>>, %arg5: memref<4x1xf32, #tpu.memory_space<vmem>>) attributes {dimension_semantics = [#tpu.dimension_semantics<parallel>, #tpu.dimension_semantics<arbitrary>, #tpu.dimension_semantics<arbitrary>], iteration_bounds = array<i64: 1, 2, 1>, scalar_prefetch = 0 : i64, scratch_operands = 0 : i64, tpu.core_type = #tpu.core_type<tc>, window_params = [{transform_indices = @transform_0, window_bounds = array<i64: 1, 4, 16>}, {transform_indices = @transform_1, window_bounds = array<i64: 4, 1>}, {transform_indices = @transform_2, window_bounds = array<i64: 4, 1>}]} {
    %c0_i32 = arith.constant 0 : i32
    %0 = arith.cmpi eq, %arg1, %c0_i32 : i32
    %c0_i32_0 = arith.constant 0 : i32
    %1 = arith.cmpi eq, %arg2, %c0_i32_0 : i32
    %2 = arith.andi %0, %1 : i1
    %3 = arith.extui %2 : i1 to i32
    %c0_i32_1 = arith.constant 0 : i32
    %4 = arith.cmpi ne, %3, %c0_i32_1 : i32
    scf.if %4 {
      %cst_13 = arith.constant 0.000000e+00 : f32
      %18 = vector.broadcast %cst_13 : f32 to vector<4x1xf32>
      %c0_14 = arith.constant 0 : index
      %c0_15 = arith.constant 0 : index
      %19 = vector.load %arg4[%c0_14, %c0_15] : memref<4x1xf32, #tpu.memory_space<vmem>>, vector<4x1xf32>
      tpu.vector_store %arg4[%c0_14, %c0_15], %18 {strides = array<i32>} : memref<4x1xf32, #tpu.memory_space<vmem>>, vector<4x1xf32>,
      %cst_16 = arith.constant 0.000000e+00 : f32
      %20 = vector.broadcast %cst_16 : f32 to vector<4x1xf32>
      %c0_17 = arith.constant 0 : index
      %c0_18 = arith.constant 0 : index
      %21 = vector.load %arg5[%c0_17, %c0_18] : memref<4x1xf32, #tpu.memory_space<vmem>>, vector<4x1xf32>
      tpu.vector_store %arg5[%c0_17, %c0_18], %20 {strides = array<i32>} : memref<4x1xf32, #tpu.memory_space<vmem>>, vector<4x1xf32>,
    } else {
    }
    %c0 = arith.constant 0 : index
    %c0_2 = arith.constant 0 : index
    %c0_3 = arith.constant 0 : index
    %5 = vector.load %arg3[%c0, %c0_2, %c0_3] : memref<1x4x16xf32, #tpu.memory_space<vmem>>, vector<1x4x16xf32>
    %6 = vector.shape_cast %5 : vector<1x4x16xf32> to vector<4x16xf32>
    %c0_4 = arith.constant 0 : index
    %c0_5 = arith.constant 0 : index
    %7 = vector.load %arg4[%c0_4, %c0_5] : memref<4x1xf32, #tpu.memory_space<vmem>>, vector<4x1xf32>
    %cst = arith.constant dense<0.000000e+00> : vector<4xf32>
    %8 = vector.multi_reduction <add>, %6, %cst [1] : vector<4x16xf32> to vector<4xf32>
    %9 = vector.shape_cast %8 : vector<4xf32> to vector<4x1xf32>
    %10 = arith.addf %7, %9 : vector<4x1xf32>
    %c0_6 = arith.constant 0 : index
    %c0_7 = arith.constant 0 : index
    %11 = vector.load %arg4[%c0_6, %c0_7] : memref<4x1xf32, #tpu.memory_space<vmem>>, vector<4x1xf32>
    tpu.vector_store %arg4[%c0_6, %c0_7], %10 {strides = array<i32>} : memref<4x1xf32, #tpu.memory_space<vmem>>, vector<4x1xf32>,
    %c0_8 = arith.constant 0 : index
    %c0_9 = arith.constant 0 : index
    %12 = vector.load %arg5[%c0_8, %c0_9] : memref<4x1xf32, #tpu.memory_space<vmem>>, vector<4x1xf32>
    %13 = arith.mulf %6, %6 : vector<4x16xf32>
    %cst_10 = arith.constant dense<0.000000e+00> : vector<4xf32>
    %14 = vector.multi_reduction <add>, %13, %cst_10 [1] : vector<4x16xf32> to vector<4xf32>
    %15 = vector.shape_cast %14 : vector<4xf32> to vector<4x1xf32>
    %16 = arith.addf %12, %15 : vector<4x1xf32>
    %c0_11 = arith.constant 0 : index
    %c0_12 = arith.constant 0 : index
    %17 = vector.load %arg5[%c0_11, %c0_12] : memref<4x1xf32, #tpu.memory_space<vmem>>, vector<4x1xf32>
    tpu.vector_store %arg5[%c0_11, %c0_12], %16 {strides = array<i32>} : memref<4x1xf32, #tpu.memory_space<vmem>>, vector<4x1xf32>,
    return
  }
  func.func @transform_0(%arg0: i32, %arg1: i32, %arg2: i32) -> (i32, i32, i32) {
    %c0_i32 = arith.constant 0 : i32
    return %arg1, %arg0, %arg2 : i32, i32, i32
  }
  func.func @transform_1(%arg0: i32, %arg1: i32, %arg2: i32) -> (i32, i32) {
    %c0_i32 = arith.constant 0 : i32
    %c0_i32_0 = arith.constant 0 : i32
    return %arg0, %c0_i32 : i32, i32
  }
  func.func @transform_2(%arg0: i32, %arg1: i32, %arg2: i32) -> (i32, i32) {
    %c0_i32 = arith.constant 0 : i32
    %c0_i32_0 = arith.constant 0 : i32
    return %arg0, %c0_i32 : i32, i32
  }
}

</mosaic_0001>

<bundles_post_ra>
// kernel: tpu_custom_call.1
= control target key start
LH: loop header
LB: loop body
LE: loop exit
PB: predicated region body
PF: predicated region fallthrough
CT: control target
= control target key end

     0   :  { %8 = vsyncpa [#allocation3], 0  ;;  %s594_s0 = inlined_call_operand.hbm [shape: f32[2,4,16], index: 0, kind: input, shape index: {}]   ;;  %s595_s1 = inlined_call_operand.vmem [shape: f32[4,1], index: 1, kind: output, shape index: {0}]   ;;  %s596_s2 = inlined_call_operand.vmem [shape: f32[4,1], index: 2, kind: output, shape index: {1}]  }
   0x1   :  { %10 = vsyncpa [#allocation3 + $0x1], 0  ;;  %s492_s9 = smov 0   ;;  %s494_s10 = smov 0  }
   0x2   :  { %s496_s11 = smov 0   ;;  %s498_s12 = smov 0  }
   0x3   :  { %s500_s13 = smov 0   ;;  %s502_s14 = smov 0  }
   0x4 LB: > { %s325_s15 = sadd.s32 4294967295, %s474_s14   ;;  %s31_s16 = sadd.s32 1, %s470_s13  ;;  %s474_s14 = sphi %s502_s14, %s16_s14   ;;  %s470_s13 = sphi %s500_s13, %s603_s13   ;;  %s466_s12 = sphi %s498_s12, %s602_s12   ;;  %s462_s11 = sphi %s496_s11, %s601_s11   ;;  %s458_s10 = sphi %s494_s10, %s600_s10   ;;  %s454_s9 = sphi %s492_s9, %s599_s9  }
   0x5   : > { %p33_p0 = scmp.ge.s32.totalorder %s31_s16, 2  ;;  %s46_s17 = sadd.s32 1, %s462_s11 }
   0x6   : > { %p53_p1 = scmp.ne.s32.totalorder %s462_s11, %s458_s10  ;;  %p54_p2 = scmp.eq.s32.totalorder %s474_s14, 0 }
   0x7   : > { %s605_s16 = smov (%p33_p0, %s31_s16), 0  ;;  %p59_p4 = scmp.ne.s32.totalorder %s458_s10, %s454_s9 }
   0x8   : > { %p528_p3 = por %p54_p2, %p53_p1  ;;  %s39_s19 = ssub.s32 %s470_s13, %s605_s16 }
   0x9   : > { %p60_p5 = scmp.eq.s32.totalorder %s325_s15, 0  ;;  %p44_p6 = scmp.eq.s32.totalorder %s39_s19, 0 }
   0xa   : > { %p344_p8 = scmp.lt.s32.totalorder %s474_s14, 2  ;;  %s135_s22 = sand.u32 1, %s462_s11  }
   0xb   : > { %p535_p7 = por %p60_p5, %p59_p4  ;;  %s329_s23 = sshll.u32 %s470_s13, 2 }
   0xc   : > { %s541_s21 = scalar_select %p44_p6, %s462_s11, %s46_s17  }
   0xd   : > { %s328_s24 = sshll.u32 %s135_s22, 2  ;;  %s145_s27 = scalar_lea.hbm %s594_s0, %s329_s23 }
   0xe   : > { %s147_s28 = sshll.u32 %s145_s27, 4  ;;  %s139_s29 = scalar_lea.vmem [#allocation2], %s328_s24  ;;  %s148_s28 = int_to_ptr.hbm [resolvable:$true] %s147_s28 }
   0xf   : > { %s149_s30 = sshll.u32 %s139_s29, 4  ;;  %p341_p9 = pnand %p344_p8, %p528_p3  ;;  %s150_s30 = int_to_ptr.vmem [resolvable:$true] %s149_s30 }
  0x10   : > { %p330_p10 = scmp.ge.s32.totalorder %s474_s14, 1  ;;  %p154_p11 = scmp.lt.s32.totalorder %s474_s14, 3 }
  0x11   : > { %s136_s3 = scalar_lea.sflag [#allocation3], %s135_s22 }
  0x12   : > { %343 = dma.hbm_to_vmem [thread:$0]  (!%p341_p9), %s148_s28, 64, %s150_s30, %s136_s3  }
  0x13   : > { %p155_p12 = pnand %p330_p10, %p154_p11 }
  0x14   : > { %s160_s4 = sand.u32 (!%p155_p12), 1, %s458_s10  }
  0x15   : > { %158 = sbr.rel (%p155_p12) target bundleno = 163 (0xa3), region = 24  ;;  %s331_s5 = sshll.u32 (!%p155_p12), %s160_s4, 2 }
  0x16   : > { %s161_s6 = scalar_lea.sflag (!%p155_p12), [#allocation3], %s160_s4  ;;  %s164_s7 = scalar_lea.vmem (!%p155_p12), [#allocation2], %s331_s5 }
  0x1a   : > { %449 = dma.done.wait (%p535_p7), %s161_s6, 64  }
  0x1b   : > { %451 = vsyncadd (%p535_p7), %s161_s6, 4294967232  ;;  %p197_p13 = scmp.eq.s32.totalorder %s466_s12, 0 }
  0x1c   : > { %vm203_vm0 = vcmask (%p197_p13), 3072   ;;  %v476_v0 = vmov (%p197_p13), 0.0  }
  0x1d   : > { %202 = sbr.rel (!%p197_p13) target bundleno = 34 (0x22), region = 32  ;;  %204 = vst.msk [vmem:[%s595_s1] sm:$0xf] (%p197_p13), %vm203_vm0, %v476_v0 }
  0x1e   : > { %205 = vst.msk [vmem:[%s596_s2] sm:$0xf] (%p197_p13), %vm203_vm0, %v476_v0 }
  0x22 PF: > { %v206_v1 = vld [vmem:[%s164_s7] sm:$0xf]  ;;  %vm208_vm1 = vcmask 125952   ;;  %vm213_vm2 = vcmask 3072  }
  0x23   : > { %v209_v2 = vsel %vm208_vm1, %v206_v1, 0.0  ;;  %v216_v3 = vmul.f32 %v206_v1, %v206_v1 }
  0x24   : > { %210 = vadd.xlane.f32.xlu0 %v209_v2  ;;  %v207_v5 = vld [vmem:[%s595_s1] sm:$0xf] }
  0x25   : > { %v217_v4 = vsel %vm208_vm1, %v216_v3, 0.0  ;;  %v215_v8 = vld [vmem:[%s596_s2] sm:$0xf] }
  0x2c   : > { %218 = vadd.xlane.f32.xlu0 %v217_v4 }
  0x97   : > { %v211_v6 = vpop.xlane.xlu0 %210 }
  0x98   : > { %v212_v7 = vadd.f32 %v211_v6, %v207_v5 }
  0x9a   : > { %214 = vst.msk [vmem:[%s595_s1] sm:$0xf] %vm213_vm2, %v212_v7 }
  0x9f   : > { %v219_v9 = vpop.xlane.xlu0 %218 }
  0xa0   : > { %v220_v10 = vadd.f32 %v219_v9, %v215_v8 }
  0xa2   : > { %221 = vst.msk [vmem:[%s596_s2] sm:$0xf] %vm213_vm2, %v220_v10 }
  0xa3 PF: > { %s16_s14 = sadd.s32 1, %s474_s14   ;;  %s599_s9 = smov %s458_s10 }
  0xa4   : > { %p13_p0 = scmp.ge.s32.totalorder %s16_s14, 4   ;;  %s600_s10 = smov %s462_s11 }
  0xa5   : > { %s601_s11 = smov %s541_s21  ;;  %s602_s12 = smov %s470_s13 }
  0xa6   : > { %s603_s13 = smov %s605_s16  ;;  %15 = sbr.rel (!%p13_p0) target bundleno = 4 (0x4), region = 80 }
  0xab   :  { %255 = vsyncpa [#allocation3], 1 }
  0xac   :  { %257 = vsyncpa [#allocation3 + $0x1], 1 }

</bundles_post_ra>
